<compile_context>
chip_gen: v6e
topology: v6e:2x2x1
jax: 0.10.0
libtpu: 0.0.40
codegen_flags: <defaults>
</compile_context>

<pallas_src>
import jax
import jax.numpy as jnp
from jax.experimental import pallas as pl
from jax.experimental.pallas import tpu as pltpu

LANE = 128      # lane-pad target for every feature dimension
SUBLANE = 8


# ----------------------------- fused Pallas kernel -----------------------------

def fused_gcn_kernel(a_ref, p_ref, invc_ref, x0_ref, w_ref, b_ref, o_ref, x_scr):
    """One grid step == one GCN layer.

    a_ref   : (Np, Np)       bf16  normalized adjacency, VMEM-resident
    p_ref   : (Bp, Np)       bf16  exact 0/1 graph-membership indicator, resident
    invc_ref: (Bp, 128)      f32   1/node-count per graph (broadcast on lanes)
    x0_ref  : (Np, 128)      bf16  embedded input features, resident
    w_ref   : (L, 128, 128)  bf16  ALL layer weights, resident (indexed by l)
    b_ref   : (L, 1, 128)    f32   ALL layer biases, resident (indexed by l)
    o_ref   : (Bp, 128)      f32   pooled graph embeddings (written at last layer)
    x_scr   : (Np, 128)      bf16  activation carried across layers
    """
    l = pl.program_id(0)
    n_layers = pl.num_programs(0)

    @pl.when(l == 0)
    def _init():
        x_scr[...] = x0_ref[...]

    x = x_scr[...]                                    # bf16 (Np, 128)
    w = w_ref[l]                                      # bf16 (128, 128)

    # X' = A_norm @ (X @ W_l) + b_l   (bf16 MXU inputs, f32 accumulation)
    xw = jnp.dot(x, w, preferred_element_type=jnp.float32)
    new_x = jnp.dot(a_ref[...], xw.astype(jnp.bfloat16),
                    preferred_element_type=jnp.float32) + b_ref[l]

    # torch: relu (+ dropout, identity in eval) on the INPUT of every conv
    # except the first and last  ==  relu on the OUTPUT of layer l for l < L-2.
    @pl.when(l < n_layers - 2)
    def _store_relu():
        x_scr[...] = jnp.maximum(new_x, 0.0).astype(x_scr.dtype)

    @pl.when(jnp.logical_and(l >= n_layers - 2, l < n_layers - 1))
    def _store_plain():
        x_scr[...] = new_x.astype(x_scr.dtype)

    # global_mean_pool fused into the last layer: bf16 0/1 sum-pool (f32 acc),
    # then scale by 1/count in f32.  Padded P columns/rows are zero, so padded
    # node activations (which equal the bias) never leak into the output.
    @pl.when(l == n_layers - 1)
    def _finalize():
        pooled = jnp.dot(p_ref[...], new_x.astype(jnp.bfloat16),
                         preferred_element_type=jnp.float32)
        o_ref[...] = (pooled * invc_ref[...]).astype(o_ref.dtype)


# ----------------------------- wrapper -----------------------------

def _round_up(x, m):
    return (x + m - 1) // m * m


def _pad2(x, rows, cols):
    return jnp.pad(x, ((0, rows - x.shape[0]), (0, cols - x.shape[1])))


def _vmem_limit_bytes():
    """Per-generation scoped-VMEM limit: physical capacity minus ~8 MiB headroom,
    capped at 112 MiB (=> ~112 MiB on v5e/v6e's 128 MiB, ~56 MiB on v7x's 64 MiB)."""
    cap = 64 * 1024 * 1024
    try:
        info = pltpu.get_tpu_info()
        cap = int(getattr(info, "vmem_capacity_bytes", cap) or cap)
    except Exception:
        pass
    return int(min(cap - 8 * 1024 * 1024, 112 * 1024 * 1024))


def gcn_forward(params, type_ids, edge_index, batch, num_graphs):
    num_nodes = type_ids.shape[0]
    out_dim = params["last_w"].shape[1]

    n_pad = _round_up(num_nodes, LANE)      # nodes on both sublane & lane axes of A
    b_pad = _round_up(num_graphs, SUBLANE)  # graphs on sublane axis of the output

    # --- plain-JAX glue: adjacency normalization, pooling indicator, embedding gather ---
    a = normalized_adjacency(edge_index, num_nodes)                 # f32 (N, N)
    a = _pad2(a, n_pad, n_pad).astype(jnp.bfloat16)                 # deliberate bf16 trade

    onehot = (batch[None, :] == jnp.arange(num_graphs)[:, None]).astype(jnp.float32)
    counts = jnp.sum(onehot, axis=1)
    inv = jnp.where(counts > 0, 1.0 / counts, 0.0)
    p = _pad2(onehot, b_pad, n_pad).astype(jnp.bfloat16)            # EXACT 0/1 in bf16
    invc = _pad2(jnp.broadcast_to(inv[:, None], (num_graphs, LANE)), b_pad, LANE)

    x0 = jnp.take(params["embedding_table"], type_ids, axis=0)      # f32 (N, E)
    x0 = _pad2(x0, n_pad, LANE).astype(jnp.bfloat16)

    # --- stack per-layer weights/biases, lane-padded to 128 (kept VMEM-resident) ---
    w_list = [params["first_w"]] + [w for (w, _) in params["mid"]] + [params["last_w"]]
    b_list = [params["first_b"]] + [b for (_, b) in params["mid"]] + [params["last_b"]]
    num_layers = len(w_list)
    w_stack = jnp.stack([_pad2(w, LANE, LANE) for w in w_list]).astype(jnp.bfloat16)
    b_stack = jnp.stack([_pad2(b, 1, LANE) for b in b_list])        # (L, 1, 128) f32

    vmem_limit = _vmem_limit_bytes()

    # Admission check for the dense-resident fast path (everything single-buffered).
    resident_bytes = (a.nbytes + p.nbytes + invc.nbytes + x0.nbytes
                      + w_stack.nbytes + b_stack.nbytes
                      + n_pad * LANE * 2          # bf16 activation scratch
                      + b_pad * LANE * 4)         # f32 output block
    if resident_bytes > vmem_limit:
        # TODO(synk): row-tiled A path (see header) for graphs beyond the budget.
        raise NotImplementedError(
            f"dense-resident GCN path needs {resident_bytes} B VMEM > limit {vmem_limit} B")

    flops = (num_layers * (2 * n_pad * LANE * LANE + 2 * n_pad * n_pad * LANE)
             + 2 * b_pad * n_pad * LANE)
    cost = pl.CostEstimate(flops=int(flops), transcendentals=0,
                           bytes_accessed=int(resident_bytes))

    out_pad = pl.pallas_call(
        fused_gcn_kernel,
        out_shape=jax.ShapeDtypeStruct((b_pad, LANE), jnp.float32),
        grid_spec=pltpu.PrefetchScalarGridSpec(
            num_scalar_prefetch=0,
            grid=(num_layers,),
            in_specs=[
                # Constant index_maps => DMA'd once, resident across layers.
                # Buffered(1): don't waste VMEM on a useless second buffer.
                pl.BlockSpec((n_pad, n_pad), lambda l: (0, 0),
                             pipeline_mode=pl.Buffered(1)),                  # A_norm
                pl.BlockSpec((b_pad, n_pad), lambda l: (0, 0),
                             pipeline_mode=pl.Buffered(1)),                  # P (0/1)
                pl.BlockSpec((b_pad, LANE), lambda l: (0, 0),
                             pipeline_mode=pl.Buffered(1)),                  # 1/counts
                pl.BlockSpec((n_pad, LANE), lambda l: (0, 0),
                             pipeline_mode=pl.Buffered(1)),                  # X0
                pl.BlockSpec((num_layers, LANE, LANE), lambda l: (0, 0, 0),
                             pipeline_mode=pl.Buffered(1)),                  # W stack
                pl.BlockSpec((num_layers, 1, LANE), lambda l: (0, 0, 0),
                             pipeline_mode=pl.Buffered(1)),                  # b stack
            ],
            out_specs=pl.BlockSpec((b_pad, LANE), lambda l: (0, 0)),
            scratch_shapes=[pltpu.VMEM((n_pad, LANE), jnp.bfloat16)],        # activation carry
        ),
        compiler_params=pltpu.CompilerParams(
            dimension_semantics=("arbitrary",),    # layer axis carries state
            vmem_limit_bytes=vmem_limit,
        ),
        cost_estimate=cost,
    )(a, p, invc, x0, w_stack, b_stack)

    return out_pad[:num_graphs, :out_dim]


# ----------------------------- GCN glue (plain JAX) -----------------------------

def normalized_adjacency(edge_index, num_nodes):
    """Dense D^{-1/2} (A + I) D^{-1/2}, matching PyG GCNConv's gcn_norm.

    Duplicate edges are summed (scatter-add) and self-loops are only added for
    nodes that do not already have one (add_remaining_self_loops semantics).
    Messages flow src -> dst, i.e. A[dst, src] = edge weight.
    """
    src, dst = edge_index[0], edge_index[1]
    adj = jnp.zeros((num_nodes, num_nodes), jnp.float32).at[dst, src].add(1.0)
    idx = jnp.arange(num_nodes)
    diag = jnp.diagonal(adj)
    adj = adj.at[idx, idx].set(jnp.where(diag > 0, diag, 1.0))
    deg = jnp.sum(adj, axis=1)
    dinv = jnp.where(deg > 0, jax.lax.rsqrt(deg), 0.0)
    return adj * dinv[:, None] * dinv[None, :]


def gcn_forward_ref(params, type_ids, edge_index, batch, num_graphs):
    """Pure-JAX f32 reference of the torch forward (eval mode)."""
    num_nodes = type_ids.shape[0]
    a = normalized_adjacency(edge_index, num_nodes)
    x = jnp.take(params["embedding_table"], type_ids, axis=0)
    w_list = [params["first_w"]] + [w for (w, _) in params["mid"]] + [params["last_w"]]
    b_list = [params["first_b"]] + [b for (_, b) in params["mid"]] + [params["last_b"]]
    n_layers = len(w_list)
    for i in range(n_layers):
        if 0 < i < n_layers - 1:
            x = jnp.maximum(x, 0.0)       # F.dropout is identity in eval
        x = a @ (x @ w_list[i]) + b_list[i]
    onehot = (batch[None, :] == jnp.arange(num_graphs)[:, None]).astype(jnp.float32)
    counts = jnp.maximum(jnp.sum(onehot, axis=1, keepdims=True), 1.0)
    return (onehot / counts) @ x


# ----------------------------- parameter init -----------------------------

def glorot(key, shape):
    limit = jnp.sqrt(6.0 / (shape[0] + shape[1]))
    return jax.random.uniform(key, shape, jnp.float32, -limit, limit)


def init_params(key, len_types, embedding_dim, hidden_dim, output_dim, num_layers):
    assert num_layers >= 2
    keys = jax.random.split(key, 3 + (num_layers - 2))
    params = {
        "embedding_table": jax.random.normal(keys[0], (len_types, embedding_dim), jnp.float32),
        "first_w": glorot(keys[1], (embedding_dim, hidden_dim)),
        "first_b": jnp.zeros((1, hidden_dim), jnp.float32),
        "last_w": glorot(keys[2], (hidden_dim, output_dim)),
        "last_b": jnp.zeros((1, output_dim), jnp.float32),
        "mid": [],
    }
    for i in range(num_layers - 2):
        params["mid"].append((glorot(keys[3 + i], (hidden_dim, hidden_dim)),
                              jnp.zeros((1, hidden_dim), jnp.float32)))
    return params


# ----------------------------- main -----------------------------

if __name__ == "__main__":
    LEN_TYPES = 6          # len(NODE_TYPES)
    HIDDEN_DIM = 32
    OUTPUT_DIM = 8
    EMBEDDING_DIM = 32     # defaults to hidden_dim in the torch module
    NUM_LAYERS = 3         # first_conv + 1 middle conv + last_conv
    NUM_NODES = 16
    NUM_GRAPHS = 2
    NUM_EDGES_PER_GRAPH = 12

    key = jax.random.PRNGKey(0)
    k_param, k_type, k_e0, k_e1 = jax.random.split(key, 4)

    params = init_params(k_param, LEN_TYPES, EMBEDDING_DIM, HIDDEN_DIM,
                         OUTPUT_DIM, NUM_LAYERS)

    # Node types (data.type) and batch assignment (data.batch): 8 nodes per graph.
    type_ids = jax.random.randint(k_type, (NUM_NODES,), 0, LEN_TYPES)
    batch = jnp.concatenate([jnp.zeros(8, jnp.int32), jnp.ones(8, jnp.int32)])

    # Random edges, kept within each graph (data.edge_index, shape [2, E]).
    e0 = jax.random.randint(k_e0, (2, NUM_EDGES_PER_GRAPH), 0, 8)
    e1 = jax.random.randint(k_e1, (2, NUM_EDGES_PER_GRAPH), 0, 8) + 8
    edge_index = jnp.concatenate([e0, e1], axis=1)

    out = gcn_forward(params, type_ids, edge_index, batch, NUM_GRAPHS)
    out = jax.block_until_ready(out)
    assert out.shape == (NUM_GRAPHS, OUTPUT_DIM)

    # Validate the bf16 MXU path against an f32 pure-JAX reference (loose tol
    # to cover the deliberate bf16 rounding of A_norm / activations).
    ref = gcn_forward_ref(params, type_ids, edge_index, batch, NUM_GRAPHS)
    max_err = float(jnp.max(jnp.abs(out - ref)))
    assert jnp.allclose(out, ref, rtol=5e-2, atol=5e-2), f"max abs err {max_err}"

    print("KERNEL_OK")
</pallas_src>

<mosaic_0001>
module attributes {stable_mosaic.version = 11 : i64} {
  func.func @fused_gcn_kernel(%arg0: i32, %arg1: memref<128x128xbf16, #tpu.memory_space<vmem>>, %arg2: memref<8x128xbf16, #tpu.memory_space<vmem>>, %arg3: memref<8x128xf32, #tpu.memory_space<vmem>>, %arg4: memref<128x128xbf16, #tpu.memory_space<vmem>>, %arg5: memref<3x128x128xbf16, #tpu.memory_space<vmem>>, %arg6: memref<3x1x128xf32, #tpu.memory_space<vmem>>, %arg7: memref<8x128xf32, #tpu.memory_space<vmem>>, %arg8: memref<128x128xbf16, #tpu.memory_space<vmem>>) attributes {dimension_semantics = [#tpu.dimension_semantics<arbitrary>], iteration_bounds = array<i64: 3>, scalar_prefetch = 0 : i64, scratch_operands = 1 : i64, tpu.core_type = #tpu.core_type<tc>, window_params = [{pipeline_mode = #tpu.pipeline_mode<synchronous>, transform_indices = @transform_0, window_bounds = array<i64: 128, 128>}, {pipeline_mode = #tpu.pipeline_mode<synchronous>, transform_indices = @transform_1, window_bounds = array<i64: 8, 128>}, {pipeline_mode = #tpu.pipeline_mode<synchronous>, transform_indices = @transform_2, window_bounds = array<i64: 8, 128>}, {pipeline_mode = #tpu.pipeline_mode<synchronous>, transform_indices = @transform_3, window_bounds = array<i64: 128, 128>}, {pipeline_mode = #tpu.pipeline_mode<synchronous>, transform_indices = @transform_4, window_bounds = array<i64: 3, 128, 128>}, {pipeline_mode = #tpu.pipeline_mode<synchronous>, transform_indices = @transform_5, window_bounds = array<i64: 3, 1, 128>}, {pipeline_mode = #tpu.pipeline_mode<synchronous>, transform_indices = @transform_6, window_bounds = array<i64: 8, 128>}]} {
    %c0_i32 = arith.constant 0 : i32
    %0 = arith.cmpi eq, %arg0, %c0_i32 : i32
    %1 = arith.extui %0 : i1 to i32
    %c0_i32_0 = arith.constant 0 : i32
    %2 = arith.cmpi ne, %1, %c0_i32_0 : i32
    scf.if %2 {
      %c0_14 = arith.constant 0 : index
      %c0_15 = arith.constant 0 : index
      %27 = vector.load %arg4[%c0_14, %c0_15] : memref<128x128xbf16, #tpu.memory_space<vmem>>, vector<128x128xbf16>
      %c0_16 = arith.constant 0 : index
      %c0_17 = arith.constant 0 : index
      %28 = vector.load %arg8[%c0_16, %c0_17] : memref<128x128xbf16, #tpu.memory_space<vmem>>, vector<128x128xbf16>
      tpu.vector_store %arg8[%c0_16, %c0_17], %27 {strides = array<i32>} : memref<128x128xbf16, #tpu.memory_space<vmem>>, vector<128x128xbf16>,
    } else {
    }
    %c0 = arith.constant 0 : index
    %c0_1 = arith.constant 0 : index
    %3 = vector.load %arg8[%c0, %c0_1] : memref<128x128xbf16, #tpu.memory_space<vmem>>, vector<128x128xbf16>
    %4 = arith.index_cast %arg0 : i32 to index
    %c0_2 = arith.constant 0 : index
    %c0_3 = arith.constant 0 : index
    %5 = vector.load %arg5[%4, %c0_2, %c0_3] : memref<3x128x128xbf16, #tpu.memory_space<vmem>>, vector<1x128x128xbf16>
    %6 = vector.shape_cast %5 : vector<1x128x128xbf16> to vector<128x128xbf16>
    %cst = arith.constant dense<0.000000e+00> : vector<128x128xf32>
    %7 = tpu.matmul %3, %6, %cst {dimension_numbers = #tpu.dot_dimension_numbers<[1], [0], [0], [1], [0, 0, 1, 1], [], []>} : vector<128x128xbf16>, vector<128x128xbf16>, vector<128x128xf32> -> vector<128x128xf32>
    %c0_4 = arith.constant 0 : index
    %c0_5 = arith.constant 0 : index
    %8 = vector.load %arg1[%c0_4, %c0_5] : memref<128x128xbf16, #tpu.memory_space<vmem>>, vector<128x128xbf16>
    %9 = arith.truncf %7 : vector<128x128xf32> to vector<128x128xbf16>
    %cst_6 = arith.constant dense<0.000000e+00> : vector<128x128xf32>
    %10 = tpu.matmul %8, %9, %cst_6 {dimension_numbers = #tpu.dot_dimension_numbers<[1], [0], [0], [1], [0, 0, 1, 1], [], []>} : vector<128x128xbf16>, vector<128x128xbf16>, vector<128x128xf32> -> vector<128x128xf32>
    %11 = arith.index_cast %arg0 : i32 to index
    %c0_7 = arith.constant 0 : index
    %c0_8 = arith.constant 0 : index
    %12 = vector.load %arg6[%11, %c0_7, %c0_8] : memref<3x1x128xf32, #tpu.memory_space<vmem>>, vector<1x1x128xf32>
    %13 = vector.shape_cast %12 : vector<1x1x128xf32> to vector<1x128xf32>
    %14 = vector.broadcast %13 : vector<1x128xf32> to vector<128x128xf32>
    %15 = arith.addf %10, %14 : vector<128x128xf32>
    %c1_i32 = arith.constant 1 : i32
    %16 = arith.cmpi slt, %arg0, %c1_i32 : i32
    %17 = arith.extui %16 : i1 to i32
    %c0_i32_9 = arith.constant 0 : i32
    %18 = arith.cmpi ne, %17, %c0_i32_9 : i32
    scf.if %18 {
      %cst_14 = arith.constant 0.000000e+00 : f32
      %27 = vector.broadcast %cst_14 : f32 to vector<128x128xf32>
      %28 = arith.maximumf %15, %27 : vector<128x128xf32>
      %29 = arith.truncf %28 : vector<128x128xf32> to vector<128x128xbf16>
      %c0_15 = arith.constant 0 : index
      %c0_16 = arith.constant 0 : index
      %30 = vector.load %arg8[%c0_15, %c0_16] : memref<128x128xbf16, #tpu.memory_space<vmem>>, vector<128x128xbf16>
      tpu.vector_store %arg8[%c0_15, %c0_16], %29 {strides = array<i32>} : memref<128x128xbf16, #tpu.memory_space<vmem>>, vector<128x128xbf16>,
    } else {
    }
    %c1_i32_10 = arith.constant 1 : i32
    %19 = arith.cmpi sge, %arg0, %c1_i32_10 : i32
    %c2_i32 = arith.constant 2 : i32
    %20 = arith.cmpi slt, %arg0, %c2_i32 : i32
    %21 = arith.andi %19, %20 : i1
    %22 = arith.extui %21 : i1 to i32
    %c0_i32_11 = arith.constant 0 : i32
    %23 = arith.cmpi ne, %22, %c0_i32_11 : i32
    scf.if %23 {
      %27 = arith.truncf %15 : vector<128x128xf32> to vector<128x128xbf16>
      %c0_14 = arith.constant 0 : index
      %c0_15 = arith.constant 0 : index
      %28 = vector.load %arg8[%c0_14, %c0_15] : memref<128x128xbf16, #tpu.memory_space<vmem>>, vector<128x128xbf16>
      tpu.vector_store %arg8[%c0_14, %c0_15], %27 {strides = array<i32>} : memref<128x128xbf16, #tpu.memory_space<vmem>>, vector<128x128xbf16>,
    } else {
    }
    %c2_i32_12 = arith.constant 2 : i32
    %24 = arith.cmpi eq, %arg0, %c2_i32_12 : i32
    %25 = arith.extui %24 : i1 to i32
    %c0_i32_13 = arith.constant 0 : i32
    %26 = arith.cmpi ne, %25, %c0_i32_13 : i32
    scf.if %26 {
      %c0_14 = arith.constant 0 : index
      %c0_15 = arith.constant 0 : index
      %27 = vector.load %arg2[%c0_14, %c0_15] : memref<8x128xbf16, #tpu.memory_space<vmem>>, vector<8x128xbf16>
      %28 = arith.truncf %15 : vector<128x128xf32> to vector<128x128xbf16>
      %cst_16 = arith.constant dense<0.000000e+00> : vector<8x128xf32>
      %29 = tpu.matmul %27, %28, %cst_16 {dimension_numbers = #tpu.dot_dimension_numbers<[1], [0], [0], [1], [0, 0, 1, 1], [], []>} : vector<8x128xbf16>, vector<128x128xbf16>, vector<8x128xf32> -> vector<8x128xf32>
      %c0_17 = arith.constant 0 : index
      %c0_18 = arith.constant 0 : index
      %30 = vector.load %arg3[%c0_17, %c0_18] : memref<8x128xf32, #tpu.memory_space<vmem>>, vector<8x128xf32>
      %31 = arith.mulf %29, %30 : vector<8x128xf32>
      %c0_19 = arith.constant 0 : index
      %c0_20 = arith.constant 0 : index
      %32 = vector.load %arg7[%c0_19, %c0_20] : memref<8x128xf32, #tpu.memory_space<vmem>>, vector<8x128xf32>
      tpu.vector_store %arg7[%c0_19, %c0_20], %31 {strides = array<i32>} : memref<8x128xf32, #tpu.memory_space<vmem>>, vector<8x128xf32>,
    } else {
    }
    return
  }
  func.func @transform_0(%arg0: i32) -> (i32, i32) {
    %c0_i32 = arith.constant 0 : i32
    %c0_i32_0 = arith.constant 0 : i32
    %c0_i32_1 = arith.constant 0 : i32
    return %c0_i32, %c0_i32_0 : i32, i32
  }
  func.func @transform_1(%arg0: i32) -> (i32, i32) {
    %c0_i32 = arith.constant 0 : i32
    %c0_i32_0 = arith.constant 0 : i32
    %c0_i32_1 = arith.constant 0 : i32
    return %c0_i32, %c0_i32_0 : i32, i32
  }
  func.func @transform_2(%arg0: i32) -> (i32, i32) {
    %c0_i32 = arith.constant 0 : i32
    %c0_i32_0 = arith.constant 0 : i32
    %c0_i32_1 = arith.constant 0 : i32
    return %c0_i32, %c0_i32_0 : i32, i32
  }
  func.func @transform_3(%arg0: i32) -> (i32, i32) {
    %c0_i32 = arith.constant 0 : i32
    %c0_i32_0 = arith.constant 0 : i32
    %c0_i32_1 = arith.constant 0 : i32
    return %c0_i32, %c0_i32_0 : i32, i32
  }
  func.func @transform_4(%arg0: i32) -> (i32, i32, i32) {
    %c0_i32 = arith.constant 0 : i32
    %c0_i32_0 = arith.constant 0 : i32
    %c0_i32_1 = arith.constant 0 : i32
    %c0_i32_2 = arith.constant 0 : i32
    return %c0_i32, %c0_i32_0, %c0_i32_1 : i32, i32, i32
  }
  func.func @transform_5(%arg0: i32) -> (i32, i32, i32) {
    %c0_i32 = arith.constant 0 : i32
    %c0_i32_0 = arith.constant 0 : i32
    %c0_i32_1 = arith.constant 0 : i32
    %c0_i32_2 = arith.constant 0 : i32
    return %c0_i32, %c0_i32_0, %c0_i32_1 : i32, i32, i32
  }
  func.func @transform_6(%arg0: i32) -> (i32, i32) {
    %c0_i32 = arith.constant 0 : i32
    %c0_i32_0 = arith.constant 0 : i32
    %c0_i32_1 = arith.constant 0 : i32
    return %c0_i32, %c0_i32_0 : i32, i32
  }
}

</mosaic_0001>

<bundles_post_ra>
// kernel: tpu_custom_call.1
= control target key start
LH: loop header
LB: loop body
LE: loop exit
PB: predicated region body
PF: predicated region fallthrough
CT: control target
= control target key end

     0   :  { %11 = vsyncpa [#allocation4], 0  ;;  %s1920_s0 = inlined_call_operand.hbm [shape: bf16[128,128], index: 0, kind: input, shape index: {}]   ;;  %s1921_s1 = inlined_call_operand.hbm [shape: bf16[8,128], index: 1, kind: input, shape index: {}]   ;;  %s1922_s2 = inlined_call_operand.hbm [shape: f32[8,128], index: 2, kind: input, shape index: {}]   ;;  %s1923_s3 = inlined_call_operand.hbm [shape: bf16[128,128], index: 3, kind: input, shape index: {}]   ;;  %s1924_s4 = inlined_call_operand.hbm [shape: bf16[3,128,128], index: 4, kind: input, shape index: {}]   ;;  %s1925_s5 = inlined_call_operand.vmem [shape: f32[3,1,128], index: 5, kind: input, shape index: {}]   ;;  %s1926_s6 = inlined_call_operand.hbm [shape: f32[8,128], index: 6, kind: output, shape index: {}]  }
   0x1   :  { %12 = vsyncpa [#allocation7], 0 }
   0x2   :  { %13 = vsyncpa [#allocation10], 0 }
   0x3   :  { %14 = vsyncpa [#allocation5], 0  ;;  %s1706_s21 = smov 0  }
   0x4 LB: > { %s1661_s22 = smov [#allocation6]   ;;  %s1712_s24 = sadd.s32 4294967295, %s1659_s21   ;;  %s1659_s21 = sphi %s1706_s21, %s20_s21  }
   0x5   : > { %s198_s23 = sshll.u32 %s1661_s22, 4  ;;  %p1059_p0 = scmp.ge.s32.totalorder %s1659_s21, 1  ;;  %s199_s23 = int_to_ptr.vmem [resolvable:$true] %s198_s23 }
   0x6   : > { %p172_p1 = scmp.lt.s32.totalorder %s1659_s21, 4  ;;  %p1429_p3 = scmp.eq.s32.totalorder %s1712_s24, 0 }
   0x7   : > { %s1662_s26 = smov [#allocation9]   ;;  %s1663_s29 = smov [#allocation3]  }
   0x8   : > { %p1718_p4 = pnand %p1059_p0, %p172_p1  ;;  %s219_s27 = sshll.u32 %s1662_s26, 4  ;;  %s1724_s27 = int_to_ptr.vmem [resolvable:$true] %s219_s27 }
   0x9   : > { %s184_s30 = sshll.u32 %s1663_s29, 4  ;;  %s1664_s7 = smov [#allocation8]   ;;  %s1732_s30 = int_to_ptr.vmem [resolvable:$true] %s184_s30 }
   0xa   : > { %p1413_p5 = pneg %p1718_p4  ;;  %s1734_s8 = sshll.u32 %s1664_s7, 4  ;;  %s210_s8 = int_to_ptr.vmem [resolvable:$true] %s1734_s8 }
   0xb   : > { %s1494_s10 = scalar_lea.vmem %s199_s23, 64  ;;  %p1502_p11 = scmp.lt.s32.totalorder %s199_s23, %s199_s23 }
   0xc   : > { %p1728_p6 = pnand %p1429_p3, %p1413_p5  ;;  %p1495_p8 = scmp.ne.s32.totalorder %s199_s23, %s1494_s10 }
   0xd   : > { %p1503_p12 = scmp.lt.s32.totalorder %s1494_s10, %s1494_s10 }
   0xe   : > { %p1738_p7 = pneg %p1728_p6 }
   0xf   : > { %p1504_p13 = por %p1503_p12, %p1502_p11 }
  0x10   : > { %p1497_p9 = pnand %p1495_p8, %p1738_p7 }
  0x12   : > { %p1498_p10 = pneg %p1497_p9 }
  0x14   : > { %p1505_p0 = pnand %p1504_p13, %p1498_p10 }
  0x16   : > { %1508 = shalt.err (!%p1505_p0)
}
  0x17   : > { %1419 = dma.hbm_to_vmem [thread:$0]  (!%p1728_p6), %s1921_s1, 64, %s199_s23, [#allocation7]  }
  0x18   : > { %s1520_s13 = scalar_lea.vmem %s1724_s27, 1024  ;;  %p1528_p9 = scmp.lt.s32.totalorder %s1724_s27, %s1724_s27 }
  0x19   : > { %p1521_p1 = scmp.ne.s32.totalorder %s1724_s27, %s1520_s13  ;;  %p1529_p11 = scmp.lt.s32.totalorder %s1520_s13, %s1520_s13 }
  0x1b   : > { %p1523_p5 = pnand %p1521_p1, %p1738_p7  ;;  %p1530_p10 = por %p1529_p11, %p1528_p9 }
  0x1d   : > { %p1524_p8 = pneg %p1523_p5 }
  0x1f   : > { %p1531_p12 = pnand %p1530_p10, %p1524_p8 }
  0x21   : > { %1534 = shalt.err (!%p1531_p12)
}
  0x22   : > { %s1665_s14 = smov 64   ;;  %s1666_s15 = smov 4  }
  0x23   : > { %1425 = dma.hbm_to_vmem [thread:$0]  (!%p1728_p6), %s1923_s3, 1024, %s1724_s27, [#allocation10], %s1665_s14, %s1665_s14, %s1666_s15  }
  0x24   : > { %s1546_s18 = scalar_lea.vmem %s1732_s30, 1024  ;;  %p1554_p5 = scmp.lt.s32.totalorder %s1732_s30, %s1732_s30 }
  0x25   : > { %p1547_p13 = scmp.ne.s32.totalorder %s1732_s30, %s1546_s18  ;;  %p1555_p8 = scmp.lt.s32.totalorder %s1546_s18, %s1546_s18 }
  0x27   : > { %p1549_p0 = pnand %p1547_p13, %p1738_p7  ;;  %p1556_p9 = por %p1555_p8, %p1554_p5 }
  0x29   : > { %p1550_p1 = pneg %p1549_p0 }
  0x2b   : > { %p1557_p11 = pnand %p1556_p9, %p1550_p1 }
  0x2d   : > { %1560 = shalt.err (!%p1557_p11)
}
  0x2e   : > { %1416 = dma.hbm_to_vmem [thread:$0]  (!%p1728_p6), %s1920_s0, 1024, %s1732_s30, [#allocation4], %s1665_s14, %s1665_s14, %s1666_s15  }
  0x2f   : > { %s1572_s22 = scalar_lea.vmem %s210_s8, 128  ;;  %p1580_p0 = scmp.lt.s32.totalorder %s210_s8, %s210_s8 }
  0x30   : > { %p1573_p10 = scmp.ne.s32.totalorder %s210_s8, %s1572_s22  ;;  %p1581_p1 = scmp.lt.s32.totalorder %s1572_s22, %s1572_s22 }
  0x32   : > { %p1575_p12 = pnand %p1573_p10, %p1738_p7  ;;  %p1582_p5 = por %p1581_p1, %p1580_p0 }
  0x34   : > { %p1576_p13 = pneg %p1575_p12 }
  0x36   : > { %p1583_p8 = pnand %p1582_p5, %p1576_p13 }
  0x38   : > { %1586 = shalt.err (!%p1583_p8)
}
  0x39   : > { %1422 = dma.hbm_to_vmem [thread:$0]  (!%p1728_p6), %s1922_s2, 128, %s210_s8, [#allocation7]  }
  0x3a   : > { %s1667_s27 = smov [#allocation11]  }
  0x3b   : > { %s232_s29 = sshll.u32 %s1667_s27, 4  ;;  %s233_s29 = int_to_ptr.vmem [resolvable:$true] %s232_s29 }
  0x3c   : > { %s1598_s30 = scalar_lea.vmem %s233_s29, 3072  ;;  %p1606_p12 = scmp.lt.s32.totalorder %s233_s29, %s233_s29 }
  0x3d   : > { %p1599_p9 = scmp.ne.s32.totalorder %s233_s29, %s1598_s30  ;;  %p1607_p2 = scmp.lt.s32.totalorder %s1598_s30, %s1598_s30 }
  0x3f   : > { %p1601_p11 = pnand %p1599_p9, %p1738_p7  ;;  %p1608_p0 = por %p1607_p2, %p1606_p12 }
  0x41   : > { %p1602_p10 = pneg %p1601_p11 }
  0x43   : > { %p1609_p13 = pnand %p1608_p0, %p1602_p10 }
  0x45   : > { %1612 = shalt.err (!%p1609_p13)
}
  0x46   : > { %1428 = dma.hbm_to_vmem [thread:$0]  (!%p1728_p6), %s1924_s4, 3072, %s233_s29, [#allocation10], %s1665_s14, %s1665_s14, %s1666_s15  }
  0x47   : > { %251 = sbr.rel (%p1718_p4) target bundleno = 886 (0x376), region = 44 }
  0x4c   : > { %1642 = dma.done.wait (%p1429_p3), [#allocation4], 1024  }
  0x4d   : > { %1644 = vsyncadd (%p1429_p3), [#allocation4], 4294966272 }
  0x4e   : > { %1646 = dma.done.wait (%p1429_p3), [#allocation7], 192  }
  0x4f   : > { %1648 = vsyncadd (%p1429_p3), [#allocation7], 4294967104 }
  0x50   : > { %1650 = dma.done.wait (%p1429_p3), [#allocation10], 4096  }
  0x51   : > { %1652 = vsyncadd (%p1429_p3), [#allocation10], 4294963200  ;;  %p1930_p2 = scmp.ne.s32.totalorder %s1712_s24, 0 }
  0x53   : > { %291 = sbr.rel (%p1930_p2) target bundleno = 93 (0x5d), region = 68 }
  0x58   : > { %v292_v0 = vld [vmem:[#allocation9] sm:$0xff]   ;;  %v294_v1 = vld [vmem:[#allocation9 + $0x8] sm:$0xff]   ;;  %v296_v2 = vld [vmem:[#allocation9 + $0x10] sm:$0xff]  }
  0x59   : > { %308 = vst [vmem:[#allocation2] sm:$0xff] %v292_v0   ;;  %310 = vst [vmem:[#allocation2 + $0x8] sm:$0xff] %v294_v1   ;;  %v298_v3 = vld [vmem:[#allocation9 + $0x18] sm:$0xff]   ;;  %v300_v4 = vld [vmem:[#allocation9 + $0x20] sm:$0xff]  }
  0x5a   : > { %312 = vst [vmem:[#allocation2 + $0x10] sm:$0xff] %v296_v2   ;;  %v302_v5 = vld [vmem:[#allocation9 + $0x28] sm:$0xff]   ;;  %314 = vst [vmem:[#allocation2 + $0x18] sm:$0xff] %v298_v3   ;;  %v304_v6 = vld [vmem:[#allocation9 + $0x30] sm:$0xff]  }
  0x5b   : > { %316 = vst [vmem:[#allocation2 + $0x20] sm:$0xff] %v300_v4   ;;  %318 = vst [vmem:[#allocation2 + $0x28] sm:$0xff] %v302_v5   ;;  %v306_v7 = vld [vmem:[#allocation9 + $0x38] sm:$0xff]  }
  0x5c   : > { %320 = vst [vmem:[#allocation2 + $0x30] sm:$0xff] %v304_v6   ;;  %322 = vst [vmem:[#allocation2 + $0x38] sm:$0xff] %v306_v7  }
  0x5d PF: > { %s1137_s25 = sshll.u32 %s1712_s24, 6  ;;  %v1475_v24 = vld [vmem:[#allocation3] sm:$0xff]   ;;  %v1476_v49 = vld [vmem:[#allocation3 + $0x8] sm:$0xff]   ;;  %v1477_v50 = vld [vmem:[#allocation3 + $0x10] sm:$0xff]   ;;  %s576_s11 = scalar_lea.vmem %s1925_s5, %s1712_s24 }
  0x5e   : > { %s342_s28 = scalar_lea.vmem [#allocation11], %s1137_s25  ;;  %1353 = vmatprep.mubr.bf16.mxu1 %v1475_v24  ;;  %v1478_v51 = vld [vmem:[#allocation3 + $0x18] sm:$0xff]   ;;  %v1479_v52 = vld [vmem:[#allocation3 + $0x20] sm:$0xff]   ;;  %v1480_v53 = vld [vmem:[#allocation3 + $0x28] sm:$0xff]   ;;  %p1099_p3 = scmp.ge.s32.totalorder %s1712_s24, 1 }
  0x5f   : > { %v1459_v9 = vld [vmem:[%s342_s28 + $0x38] sm:$0xff]   ;;  %v1460_v10 = vld [vmem:[%s342_s28 + $0x30] sm:$0xff]   ;;  %v1461_v11 = vld [vmem:[%s342_s28 + $0x28] sm:$0xff]  }
  0x60   : > { %v1467_v8 = vld [vmem:[#allocation2] sm:$0xff]   ;;  %1305 = vmatprep.subr.bf16.mxu0 %v1459_v9  ;;  %v1463_v13 = vld [vmem:[%s342_s28 + $0x18] sm:$0xff]   ;;  %v1464_v14 = vld [vmem:[%s342_s28 + $0x10] sm:$0xff]  }
  0x61   : > { %1321 = vmatprep.mubr.bf16.mxu0 %v1467_v8  ;;  %1306 = vmatpush3.bf16.msra.mxu0 %v1459_v9  ;;  %v1462_v12 = vld [vmem:[%s342_s28 + $0x20] sm:$0xff]   ;;  %v1465_v15 = vld [vmem:[%s342_s28 + $0x8] sm:$0xff]   ;;  %v1469_v18 = vld [vmem:[#allocation2 + $0x10] sm:$0xff]  }
  0x62   : > { %1307 = vmatprep.subr.bf16.mxu0 %v1460_v10  ;;  %v1466_v16 = vld [vmem:[%s342_s28] sm:$0xff]   ;;  %v1468_v17 = vld [vmem:[#allocation2 + $0x8] sm:$0xff]   ;;  %v1470_v19 = vld [vmem:[#allocation2 + $0x18] sm:$0xff]  }
  0x63   : > { %v1471_v20 = vld [vmem:[#allocation2 + $0x20] sm:$0xff]   ;;  %v1472_v21 = vld [vmem:[#allocation2 + $0x28] sm:$0xff]   ;;  %v1473_v22 = vld [vmem:[#allocation2 + $0x30] sm:$0xff]  }
  0x64   : > { %v1474_v23 = vld [vmem:[#allocation2 + $0x38] sm:$0xff]   ;;  %v1481_v54 = vld [vmem:[#allocation3 + $0x30] sm:$0xff]   ;;  %v1090_v56 = vld [vmem:[%s576_s11] ss:$0 sm:$0xff] }
  0x65   : > { %1308 = vmatpush3.bf16.msra.mxu0 %v1460_v10  ;;  %v1482_v55 = vld [vmem:[#allocation3 + $0x38] sm:$0xff]  }
  0x66   : > { %1309 = vmatprep.subr.bf16.mxu0 %v1461_v11 }
  0x69   : > { %1310 = vmatpush3.bf16.msra.mxu0 %v1461_v11 }
  0x6a   : > { %1311 = vmatprep.subr.bf16.mxu0 %v1462_v12 }
  0x6d   : > { %1312 = vmatpush3.bf16.msra.mxu0 %v1462_v12 }
  0x6e   : > { %1313 = vmatprep.subr.bf16.mxu0 %v1463_v13 }
  0x71   : > { %1314 = vmatpush3.bf16.msra.mxu0 %v1463_v13 }
  0x72   : > { %1315 = vmatprep.subr.bf16.mxu0 %v1464_v14 }
  0x75   : > { %1316 = vmatpush3.bf16.msra.mxu0 %v1464_v14 }
  0x76   : > { %1317 = vmatprep.subr.bf16.mxu0 %v1465_v15 }
  0x79   : > { %1318 = vmatpush3.bf16.msra.mxu0 %v1465_v15 }
  0x7a   : > { %1319 = vmatprep.subr.bf16.mxu0 %v1466_v16 }
  0x7d   : > { %1320 = vmatpush3.bf16.msra.mxu0 %v1466_v16 }
  0x80   : > { %1322 = vmatmul.mubr.bf16.vlgmr.msra.gmra.mxu0 %v1468_v17 }
  0x81   : > { %1325 = vmatprep.mubr.bf16.mxu0 %v1469_v18 }
  0x88   : > { %1326 = vmatmul.mubr.bf16.gmra.mxu0 %v1470_v19 }
  0x89   : > { %1329 = vmatprep.mubr.bf16.mxu0 %v1471_v20 }
  0x90   : > { %1330 = vmatmul.mubr.bf16.gmra.mxu0 %v1472_v21 }
  0x91   : > { %1333 = vmatprep.mubr.bf16.mxu0 %v1473_v22 }
  0x98   : > { %1334 = vmatmul.mubr.bf16.gmra.mxu0 %v1474_v23 }
 0x140   : > { %v1323_v25 = vpop.f32.mrf.mxu0 }
 0x142   : > { %v489_v26 = vpop.f32.mrf.mxu0 }
 0x144   : > { %v1324_v27 = vpop.f32.mrf.mxu0 }
 0x145   : > { %v569_v47 = vpack.c.bf16 %v1324_v27, %v1323_v25 }
 0x146   : > { %v492_v28 = vpop.f32.mrf.mxu0 }
 0x147   : > { %v568_v48 = vpack.c.bf16 %v492_v28, %v489_v26 }
 0x148   : > { %v1327_v29 = vpop.f32.mrf.mxu0 }
 0x14a   : > { %v505_v30 = vpop.f32.mrf.mxu0 }
 0x14c   : > { %v1328_v31 = vpop.f32.mrf.mxu0 }
 0x14d   : > { %v571_v45 = vpack.c.bf16 %v1328_v31, %v1327_v29 }
 0x14e   : > { %v508_v32 = vpop.f32.mrf.mxu0 }
 0x14f   : > { %v570_v46 = vpack.c.bf16 %v508_v32, %v505_v30 }
 0x150   : > { %v1331_v33 = vpop.f32.mrf.mxu0 }
 0x152   : > { %v521_v34 = vpop.f32.mrf.mxu0 }
 0x154   : > { %v1332_v35 = vpop.f32.mrf.mxu0 }
 0x155   : > { %v573_v43 = vpack.c.bf16 %v1332_v35, %v1331_v33 }
 0x156   : > { %v524_v36 = vpop.f32.mrf.mxu0 }
 0x157   : > { %v572_v44 = vpack.c.bf16 %v524_v36, %v521_v34 }
 0x158   : > { %v1335_v37 = vpop.f32.mrf.mxu0 }
 0x15a   : > { %v537_v38 = vpop.f32.mrf.mxu0 }
 0x15c   : > { %v1336_v39 = vpop.f32.mrf.mxu0 }
 0x15d   : > { %v575_v40 = vpack.c.bf16 %v1336_v39, %v1335_v37 }
 0x15e   : > { %v540_v41 = vpop.f32.mrf.mxu0 }
 0x15f   : > { %v574_v42 = vpack.c.bf16 %v540_v41, %v537_v38  ;;  %1337 = vmatprep.subr.bf16.mxu1 %v575_v40 }
 0x160   : > { %1338 = vmatpush3.bf16.msra.mxu1 %v575_v40 }
 0x161   : > { %1339 = vmatprep.subr.bf16.mxu1 %v574_v42 }
 0x164   : > { %1340 = vmatpush3.bf16.msra.mxu1 %v574_v42 }
 0x165   : > { %1341 = vmatprep.subr.bf16.mxu1 %v573_v43 }
 0x168   : > { %1342 = vmatpush3.bf16.msra.mxu1 %v573_v43 }
 0x169   : > { %1343 = vmatprep.subr.bf16.mxu1 %v572_v44 }
 0x16c   : > { %1344 = vmatpush3.bf16.msra.mxu1 %v572_v44 }
 0x16d   : > { %1345 = vmatprep.subr.bf16.mxu1 %v571_v45 }
 0x170   : > { %1346 = vmatpush3.bf16.msra.mxu1 %v571_v45 }
 0x171   : > { %1347 = vmatprep.subr.bf16.mxu1 %v570_v46 }
 0x174   : > { %1348 = vmatpush3.bf16.msra.mxu1 %v570_v46 }
 0x175   : > { %1349 = vmatprep.subr.bf16.mxu1 %v569_v47 }
 0x178   : > { %1350 = vmatpush3.bf16.msra.mxu1 %v569_v47 }
 0x179   : > { %1351 = vmatprep.subr.bf16.mxu1 %v568_v48 }
 0x17c   : > { %1352 = vmatpush3.bf16.msra.mxu1 %v568_v48 }
 0x17f   : > { %1354 = vmatmul.mubr.bf16.vlgmr.msra.gmra.mxu1 %v1476_v49 }
 0x180   : > { %1357 = vmatprep.mubr.bf16.mxu1 %v1477_v50 }
 0x187   : > { %1358 = vmatmul.mubr.bf16.gmra.mxu1 %v1478_v51 }
 0x188   : > { %1361 = vmatprep.mubr.bf16.mxu1 %v1479_v52 }
 0x18f   : > { %1362 = vmatmul.mubr.bf16.gmra.mxu1 %v1480_v53 }
 0x190   : > { %1365 = vmatprep.mubr.bf16.mxu1 %v1481_v54 }
 0x197   : > { %1366 = vmatmul.mubr.bf16.gmra.mxu1 %v1482_v55 }
 0x23f   : > { %v1355_v57 = vpop.f32.mrf.mxu1 }
 0x240   : > { %v1818_v58 = vadd.f32 %v1355_v57, %v1090_v56 }
 0x241   : > { %v666_v59 = vpop.f32.mrf.mxu1 }
 0x242   : > { %v1820_v60 = vadd.f32 %v1090_v56, %v666_v59 }
 0x243   : > { %v1356_v61 = vpop.f32.mrf.mxu1 }
 0x244   : > { %v1822_v62 = vadd.f32 %v1356_v61, %v1090_v56 }
 0x245   : > { %v669_v63 = vpop.f32.mrf.mxu1 }
 0x246   : > { %v1824_v0 = vadd.f32 %v1090_v56, %v669_v63 }
 0x247   : > { %v1359_v1 = vpop.f32.mrf.mxu1 }
 0x248   : > { %v1826_v2 = vadd.f32 %v1359_v1, %v1090_v56 }
 0x249   : > { %v682_v3 = vpop.f32.mrf.mxu1 }
 0x24a   : > { %v1828_v4 = vadd.f32 %v1090_v56, %v682_v3 }
 0x24b   : > { %v1360_v5 = vpop.f32.mrf.mxu1 }
 0x24c   : > { %v1830_v6 = vadd.f32 %v1360_v5, %v1090_v56 }
 0x24d   : > { %v685_v7 = vpop.f32.mrf.mxu1 }
 0x24e   : > { %v1832_v8 = vadd.f32 %v1090_v56, %v685_v7 }
 0x24f   : > { %v1363_v9 = vpop.f32.mrf.mxu1 }
 0x250   : > { %v1834_v10 = vadd.f32 %v1363_v9, %v1090_v56 }
 0x251   : > { %v698_v11 = vpop.f32.mrf.mxu1 }
 0x252   : > { %v1836_v12 = vadd.f32 %v1090_v56, %v698_v11 }
 0x253   : > { %v1364_v13 = vpop.f32.mrf.mxu1 }
 0x254   : > { %v1838_v14 = vadd.f32 %v1364_v13, %v1090_v56 }
 0x255   : > { %v701_v15 = vpop.f32.mrf.mxu1 }
 0x256   : > { %v1840_v16 = vadd.f32 %v1090_v56, %v701_v15 }
 0x257   : > { %v1367_v17 = vpop.f32.mrf.mxu1 }
 0x258   : > { %v1842_v18 = vadd.f32 %v1367_v17, %v1090_v56 }
 0x259   : > { %v714_v19 = vpop.f32.mrf.mxu1 }
 0x25a   : > { %v1844_v20 = vadd.f32 %v1090_v56, %v714_v19  ;;  %732 = sbr.rel (%p1099_p3) target bundleno = 617 (0x269), region = 72 }
 0x25b   : > { %v1368_v21 = vpop.f32.mrf.mxu1 }
 0x25c   : > { %v1846_v22 = vadd.f32 %v1368_v21, %v1090_v56 }
 0x25d   : > { %v717_v23 = vpop.f32.mrf.mxu1 }
 0x25e   : > { %v1848_v24 = vadd.f32 %v1090_v56, %v717_v23 }
 0x25f   : > { %v733_v25 = vmax.f32 %v1820_v60, 0.0  ;;  %v734_v26 = vmax.f32 %v1824_v0, 0.0  ;;  %v735_v27 = vmax.f32 %v1818_v58, 0.0  ;;  %v736_v28 = vmax.f32 %v1822_v62, 0.0 }
 0x260   : > { %v737_v29 = vmax.f32 %v1828_v4, 0.0  ;;  %v738_v30 = vmax.f32 %v1832_v8, 0.0  ;;  %v739_v31 = vmax.f32 %v1826_v2, 0.0  ;;  %v740_v32 = vmax.f32 %v1830_v6, 0.0 }
 0x261   : > { %v1173_v33 = vpack.c.bf16 %v734_v26, %v733_v25  ;;  %v1178_v34 = vpack.c.bf16 %v736_v28, %v735_v27  ;;  %v741_v35 = vmax.f32 %v1836_v12, 0.0  ;;  %v742_v36 = vmax.f32 %v1840_v16, 0.0 }
 0x262   : > { %v1183_v37 = vpack.c.bf16 %v738_v30, %v737_v29  ;;  %v1188_v38 = vpack.c.bf16 %v740_v32, %v739_v31  ;;  %v743_v39 = vmax.f32 %v1834_v10, 0.0  ;;  %v744_v40 = vmax.f32 %v1838_v14, 0.0 }
 0x263   : > { %1174 = vst [vmem:[#allocation2] sm:$0xff] %v1173_v33   ;;  %1250 = vst [vmem:[#allocation2 + $0x8] sm:$0xff] %v1178_v34   ;;  %v1193_v41 = vpack.c.bf16 %v742_v36, %v741_v35  ;;  %v745_v42 = vmax.f32 %v1844_v20, 0.0  ;;  %v746_v43 = vmax.f32 %v1848_v24, 0.0  ;;  %v747_v44 = vmax.f32 %v1842_v18, 0.0 }
 0x264   : > { %1251 = vst [vmem:[#allocation2 + $0x10] sm:$0xff] %v1183_v37   ;;  %1252 = vst [vmem:[#allocation2 + $0x18] sm:$0xff] %v1188_v38   ;;  %v1198_v45 = vpack.c.bf16 %v744_v40, %v743_v39  ;;  %v748_v46 = vmax.f32 %v1846_v22, 0.0 }
 0x265   : > { %1253 = vst [vmem:[#allocation2 + $0x20] sm:$0xff] %v1193_v41   ;;  %v1203_v47 = vpack.c.bf16 %v746_v43, %v745_v42 }
 0x266   : > { %1254 = vst [vmem:[#allocation2 + $0x28] sm:$0xff] %v1198_v45   ;;  %v1208_v48 = vpack.c.bf16 %v748_v46, %v747_v44 }
 0x267   : > { %1255 = vst [vmem:[#allocation2 + $0x30] sm:$0xff] %v1203_v47  }
 0x268   : > { %1256 = vst [vmem:[#allocation2 + $0x38] sm:$0xff] %v1208_v48  }
 0x269 PF: > { %p830_p4 = scmp.lt.s32.totalorder %s1712_s24, 2 }
 0x26b   : > { %p831_p6 = pnand %p1099_p3, %p830_p4 }
 0x26d   : > { %834 = sbr.rel (%p831_p6) target bundleno = 632 (0x278), region = 76 }
 0x272   : > { %v1213_v49 = vpack.c.bf16 %v1824_v0, %v1820_v60  ;;  %v1218_v50 = vpack.c.bf16 %v1822_v62, %v1818_v58  ;;  %v1223_v51 = vpack.c.bf16 %v1832_v8, %v1828_v4  ;;  %v1228_v52 = vpack.c.bf16 %v1830_v6, %v1826_v2 }
 0x273   : > { %v1233_v53 = vpack.c.bf16 %v1840_v16, %v1836_v12  ;;  %v1238_v54 = vpack.c.bf16 %v1838_v14, %v1834_v10  ;;  %v1243_v55 = vpack.c.bf16 %v1848_v24, %v1844_v20  ;;  %v1248_v56 = vpack.c.bf16 %v1846_v22, %v1842_v18 }
 0x274   : > { %1214 = vst [vmem:[#allocation2] sm:$0xff] %v1213_v49   ;;  %1257 = vst [vmem:[#allocation2 + $0x8] sm:$0xff] %v1218_v50  }
 0x275   : > { %1258 = vst [vmem:[#allocation2 + $0x10] sm:$0xff] %v1223_v51   ;;  %1259 = vst [vmem:[#allocation2 + $0x18] sm:$0xff] %v1228_v52  }
 0x276   : > { %1260 = vst [vmem:[#allocation2 + $0x20] sm:$0xff] %v1233_v53   ;;  %1261 = vst [vmem:[#allocation2 + $0x28] sm:$0xff] %v1238_v54  }
 0x277   : > { %1262 = vst [vmem:[#allocation2 + $0x30] sm:$0xff] %v1243_v55   ;;  %1263 = vst [vmem:[#allocation2 + $0x38] sm:$0xff] %v1248_v56  }
 0x278 PF: > { %p1132_p7 = scmp.ne.s32.totalorder %s1712_s24, 2 }
 0x27a   : > { %918 = sbr.rel (%p1132_p7) target bundleno = 871 (0x367), region = 80 }
 0x27f   : > { %v927_v57 = vpack.c.bf16 %v1846_v22, %v1842_v18  ;;  %v1668_v59 = vmov 0.0   ;;  %v926_v61 = vpack.c.bf16 %v1848_v24, %v1844_v20  ;;  %vm1669_vm0 = vmmov 0  }
 0x280   : > { %1369 = vmatprep.subr.bf16.mxu0 %v1668_v59  ;;  %1385 = vmatprep.mubr.msk.bf16.mxu0 %vm1669_vm0, %v1668_v59  ;;  %v925_v63 = vpack.c.bf16 %v1838_v14, %v1834_v10  ;;  %v924_v1 = vpack.c.bf16 %v1840_v16, %v1836_v12  ;;  %v923_v3 = vpack.c.bf16 %v1830_v6, %v1826_v2  ;;  %v919_v10 = vld [vmem:[#allocation6] sm:$0xf]  ;;  %v968_v2 = vld [vmem:[#allocation8] sm:$0xff] }
 0x281   : > { %1370 = vmatpush3.bf16.msra.mxu0 %v927_v57  ;;  %v922_v5 = vpack.c.bf16 %v1832_v8, %v1828_v4  ;;  %v921_v7 = vpack.c.bf16 %v1822_v62, %v1818_v58  ;;  %v920_v9 = vpack.c.bf16 %v1824_v0, %v1820_v60 }
 0x282   : > { %1371 = vmatprep.subr.bf16.mxu0 %v1668_v59 }
 0x285   : > { %1372 = vmatpush3.bf16.msra.mxu0 %v926_v61 }
 0x286   : > { %1373 = vmatprep.subr.bf16.mxu0 %v1668_v59 }
 0x289   : > { %1374 = vmatpush3.bf16.msra.mxu0 %v925_v63 }
 0x28a   : > { %1375 = vmatprep.subr.bf16.mxu0 %v1668_v59 }
 0x28d   : > { %1376 = vmatpush3.bf16.msra.mxu0 %v924_v1 }
 0x28e   : > { %1377 = vmatprep.subr.bf16.mxu0 %v1668_v59 }
 0x291   : > { %1378 = vmatpush3.bf16.msra.mxu0 %v923_v3 }
 0x292   : > { %1379 = vmatprep.subr.bf16.mxu0 %v1668_v59 }
 0x295   : > { %1380 = vmatpush3.bf16.msra.mxu0 %v922_v5 }
 0x296   : > { %1381 = vmatprep.subr.bf16.mxu0 %v1668_v59 }
 0x299   : > { %1382 = vmatpush3.bf16.msra.mxu0 %v921_v7 }
 0x29a   : > { %1383 = vmatprep.subr.bf16.mxu0 %v1668_v59 }
 0x29d   : > { %1384 = vmatpush3.bf16.msra.mxu0 %v920_v9 }
 0x2a0   : > { %1386 = vmatmul.mubr.bf16.vlgmr.msra.gmra.mxu0 %v919_v10 }
 0x360   : > { %v962_v6 = vpop.f32.mrf.mxu0 }
 0x361   : > { %v969_v11 = vmul.f32 %v968_v2, %v962_v6 }
 0x362   : > { %v1387_v12 = vpop.f32.mrf.mxu0 }
 0x363   : > { %970 = vst [vmem:[#allocation12] sm:$0xff] %v969_v11 }
 0x364   : > { %v965_v4 = vpop.f32.mrf.mxu0 }
 0x366   : > { %v1388_v8 = vpop.f32.mrf.mxu0 }
 0x367 PF: > { %p1439_p1 = scmp.eq.s32.totalorder %s1712_s24, 2  ;;  %s1670_s12 = smov [#allocation12]  }
 0x368   : > { %s978_s13 = sshll.u32 %s1670_s12, 4  ;;  %s979_s13 = int_to_ptr.vmem [resolvable:$true] %s978_s13 }
 0x369   : > { %s1613_s14 = scalar_lea.vmem %s979_s13, 128  ;;  %p1620_p11 = scmp.lt.s32.totalorder %s979_s13, %s979_s13 }
 0x36a   : > { %p1614_p5 = scmp.ne.s32.totalorder %s979_s13, %s1613_s14  ;;  %p1621_p10 = scmp.lt.s32.totalorder %s1613_s14, %s1613_s14 }
 0x36c   : > { %p1615_p8 = pnand %p1614_p5, %p1439_p1  ;;  %p1622_p12 = por %p1621_p10, %p1620_p11 }
 0x36e   : > { %p1616_p9 = pneg %p1615_p8 }
 0x370   : > { %p1623_p0 = pnand %p1622_p12, %p1616_p9 }
 0x372   : > { %1626 = shalt.err (!%p1623_p0)
}
 0x373   : > { %1410 = dma.vmem_to_hbm [thread:$0]  (%p1439_p1), %s979_s13, 128, %s1926_s6, [#allocation5]  }
 0x374   : > { %1654 = dma.done.wait (%p1439_p1), [#allocation5], 128  }
 0x375   : > { %1656 = vsyncadd (%p1439_p1), [#allocation5], 4294967168 }
 0x376 PF: > { %s20_s21 = sadd.s32 1, %s1659_s21  }
 0x377   : > { %p17_p13 = scmp.ge.s32.totalorder %s20_s21, 5  }
 0x379   :  { %19 = sbr.rel (!%p17_p13) target bundleno = 4 (0x4), region = 107 }
 0x37e   :  { %991 = vsyncpa [#allocation4], 1 }
 0x37f   :  { %993 = vsyncpa [#allocation4 + $0x1], 1 }
 0x380   :  { %994 = vsyncpa [#allocation7], 1 }
 0x381   :  { %995 = vsyncpa [#allocation10], 1 }
 0x382   :  { %996 = vsyncpa [#allocation5], 1 }
 0x383   :  { %998 = vsyncpa [#allocation5 + $0x1], 1 }

</bundles_post_ra>
